<compile_context>
chip_gen: v5e
topology: v5e:2x2
jax: 0.10.0
libtpu: 0.0.40
codegen_flags: <defaults>
</compile_context>

<pallas_src>
import jax
import jax.numpy as jnp
from jax.experimental import pallas as pl
from jax.experimental.pallas import tpu as pltpu

LANE = 128  # pad class axis to one full lane register


def ff_kernel(ids_ref, tw1_ref, w2_ref, b2_ref, out_ref, h_ref):
    # ids_ref: SMEM (B,)    int32  token ids
    # tw1_ref: VMEM (V, H)  f32    emb_table @ W1 + b1 (pre-folded at init)
    # w2_ref:  VMEM (H, Cp) f32    W2 zero-padded on the class axis (Cp = 128)
    # b2_ref:  VMEM (1, Cp) f32    b2, padded class slots = -1e30
    # out_ref: VMEM (B, Cp) f32    softmax over the padded class axis
    # h_ref:   VMEM (B, H)  f32    scratch for gathered hidden pre-activations
    B = h_ref.shape[0]

    # Embedding lookup + first Linear fused: the table is pre-folded, so the whole
    # first layer degenerates to a row gather (scalar id from SMEM -> dynamic row slice).
    for b in range(B):  # B is small and static; fully unrolled
        h_ref[pl.ds(b, 1), :] = tw1_ref[pl.ds(ids_ref[b], 1), :]

    h = jnp.maximum(h_ref[...], 0.0)                                   # ReLU

    logits = jnp.dot(h, w2_ref[...],
                     preferred_element_type=jnp.float32) + b2_ref[...]  # (B, Cp)

    # Softmax over the padded class axis; padded logits are ~-1e30 so exp -> 0 exactly.
    m = jnp.max(logits, axis=1, keepdims=True)
    e = jnp.exp(logits - m)                                            # f32 EUP
    # approx=True -> EUP vrcp (otherwise-idle slot); error ~1e-5, fine for softmax.
    out_ref[...] = e * pl.reciprocal(jnp.sum(e, axis=1, keepdims=True), approx=True)


def fold_params(emb_table, w1, b1, w2, b2, padded_classes=LANE):
    """One-time (init-time) folding -- NOT part of the per-call path."""
    emb_table = emb_table.astype(jnp.float32)
    w1 = w1.astype(jnp.float32)
    b1 = b1.astype(jnp.float32)
    w2 = w2.astype(jnp.float32)
    b2 = b2.astype(jnp.float32)
    H = w1.shape[1]
    C = w2.shape[1]
    assert C <= padded_classes
    tw1b = emb_table @ w1 + b1[None, :]                                  # (V, H)
    w2p = jnp.zeros((H, padded_classes), jnp.float32).at[:, :C].set(w2)  # (H, 128)
    b2p = jnp.full((1, padded_classes), -1e30, jnp.float32).at[0, :C].set(b2)
    return tw1b, w2p, b2p


def feedforward(ids, tw1b, w2p, b2p, num_classes):
    B = ids.shape[0]
    V, H = tw1b.shape
    Cp = w2p.shape[1]
    ids = ids.astype(jnp.int32)

    cost = pl.CostEstimate(
        flops=2 * B * H * Cp,                 # second-layer matmul dominates
        transcendentals=B * Cp + B,           # exp + approx reciprocal
        bytes_accessed=4 * (tw1b.size + w2p.size + b2p.size + B * Cp) + 4 * B,
    )

    # No grid: whole problem (~tens of KB) lives in VMEM; a single-block call
    # issues one DMA per operand and skips all pipeline scaffolding.
    out = pl.pallas_call(
        ff_kernel,
        out_shape=jax.ShapeDtypeStruct((B, Cp), jnp.float32),
        in_specs=[
            pl.BlockSpec(memory_space=pltpu.MemorySpace.SMEM),   # token ids
            pl.BlockSpec(memory_space=pltpu.MemorySpace.VMEM),   # folded emb@W1 + b1
            pl.BlockSpec(memory_space=pltpu.MemorySpace.VMEM),   # padded W2
            pl.BlockSpec(memory_space=pltpu.MemorySpace.VMEM),   # padded b2
        ],
        out_specs=pl.BlockSpec(memory_space=pltpu.MemorySpace.VMEM),
        scratch_shapes=[pltpu.VMEM((B, H), jnp.float32)],
        cost_estimate=cost,
    )(ids, tw1b, w2p, b2p)

    return out[:, :num_classes]


def reference(ids, emb_table, w1, b1, w2, b2):
    emb = emb_table[ids]
    h = jnp.maximum(emb @ w1 + b1, 0.0)
    logits = h @ w2 + b2
    return jax.nn.softmax(logits, axis=1)


if __name__ == "__main__":
    # Model(output_size=10, vocab_size=32, embed_dim=16); hidden size 64 is fixed.
    output_size, vocab_size, embed_dim, hidden = 10, 32, 16, 64
    batch = 16

    key = jax.random.PRNGKey(0)
    k_ids, k_emb, k_w1, k_b1, k_w2, k_b2 = jax.random.split(key, 6)

    ids = jax.random.randint(k_ids, (batch,), 0, vocab_size, dtype=jnp.int32)
    emb_table = jax.random.normal(k_emb, (vocab_size, embed_dim), jnp.float32) * 0.1
    # PyTorch nn.Linear stores weight as (out, in); we store the transpose (in, out).
    w1 = jax.random.normal(k_w1, (embed_dim, hidden), jnp.float32) * 0.1
    b1 = jax.random.normal(k_b1, (hidden,), jnp.float32) * 0.1
    w2 = jax.random.normal(k_w2, (hidden, output_size), jnp.float32) * 0.1
    b2 = jax.random.normal(k_b2, (output_size,), jnp.float32) * 0.1

    # Init-time folding (hoisted out of the per-call path; jit-closed as constants).
    tw1b, w2p, b2p = fold_params(emb_table, w1, b1, w2, b2)
    tw1b, w2p, b2p = jax.block_until_ready((tw1b, w2p, b2p))

    fwd = jax.jit(lambda token_ids: feedforward(token_ids, tw1b, w2p, b2p, output_size))
    out = jax.block_until_ready(fwd(ids))

    ref = reference(ids, emb_table, w1, b1, w2, b2)
    assert out.shape == (batch, output_size)
    # Tolerance accommodates the EUP approx reciprocal (error ~1e-5).
    assert jnp.allclose(out, ref, atol=1e-3, rtol=1e-3), float(jnp.max(jnp.abs(out - ref)))
    print("KERNEL_OK")
</pallas_src>

<mosaic_0001>
module attributes {stable_mosaic.version = 11 : i64} {
  func.func @ff_kernel(%arg0: memref<16xi32, #tpu.memory_space<smem>>, %arg1: memref<32x64xf32, #tpu.memory_space<vmem>>, %arg2: memref<64x128xf32, #tpu.memory_space<vmem>>, %arg3: memref<1x128xf32, #tpu.memory_space<vmem>>, %arg4: memref<16x128xf32, #tpu.memory_space<vmem>>, %arg5: memref<16x64xf32, #tpu.memory_space<vmem>>) attributes {dimension_semantics = [], scalar_prefetch = 0 : i64, scratch_operands = 1 : i64, tpu.core_type = #tpu.core_type<tc>} {
    %c0 = arith.constant 0 : index
    %0 = memref.load %arg0[%c0] : memref<16xi32, #tpu.memory_space<smem>>
    %1 = arith.index_cast %0 : i32 to index
    %c0_0 = arith.constant 0 : index
    %2 = vector.load %arg1[%1, %c0_0] : memref<32x64xf32, #tpu.memory_space<vmem>>, vector<1x64xf32>
    %c0_1 = arith.constant 0 : index
    %c0_2 = arith.constant 0 : index
    %3 = vector.load %arg5[%c0_1, %c0_2] : memref<16x64xf32, #tpu.memory_space<vmem>>, vector<1x64xf32>
    tpu.vector_store %arg5[%c0_1, %c0_2], %2 {strides = array<i32>} : memref<16x64xf32, #tpu.memory_space<vmem>>, vector<1x64xf32>,
    %c1 = arith.constant 1 : index
    %4 = memref.load %arg0[%c1] : memref<16xi32, #tpu.memory_space<smem>>
    %5 = arith.index_cast %4 : i32 to index
    %c0_3 = arith.constant 0 : index
    %6 = vector.load %arg1[%5, %c0_3] : memref<32x64xf32, #tpu.memory_space<vmem>>, vector<1x64xf32>
    %c1_4 = arith.constant 1 : index
    %c0_5 = arith.constant 0 : index
    %7 = vector.load %arg5[%c1_4, %c0_5] : memref<16x64xf32, #tpu.memory_space<vmem>>, vector<1x64xf32>
    tpu.vector_store %arg5[%c1_4, %c0_5], %6 {strides = array<i32>} : memref<16x64xf32, #tpu.memory_space<vmem>>, vector<1x64xf32>,
    %c2 = arith.constant 2 : index
    %8 = memref.load %arg0[%c2] : memref<16xi32, #tpu.memory_space<smem>>
    %9 = arith.index_cast %8 : i32 to index
    %c0_6 = arith.constant 0 : index
    %10 = vector.load %arg1[%9, %c0_6] : memref<32x64xf32, #tpu.memory_space<vmem>>, vector<1x64xf32>
    %c2_7 = arith.constant 2 : index
    %c0_8 = arith.constant 0 : index
    %11 = vector.load %arg5[%c2_7, %c0_8] : memref<16x64xf32, #tpu.memory_space<vmem>>, vector<1x64xf32>
    tpu.vector_store %arg5[%c2_7, %c0_8], %10 {strides = array<i32>} : memref<16x64xf32, #tpu.memory_space<vmem>>, vector<1x64xf32>,
    %c3 = arith.constant 3 : index
    %12 = memref.load %arg0[%c3] : memref<16xi32, #tpu.memory_space<smem>>
    %13 = arith.index_cast %12 : i32 to index
    %c0_9 = arith.constant 0 : index
    %14 = vector.load %arg1[%13, %c0_9] : memref<32x64xf32, #tpu.memory_space<vmem>>, vector<1x64xf32>
    %c3_10 = arith.constant 3 : index
    %c0_11 = arith.constant 0 : index
    %15 = vector.load %arg5[%c3_10, %c0_11] : memref<16x64xf32, #tpu.memory_space<vmem>>, vector<1x64xf32>
    tpu.vector_store %arg5[%c3_10, %c0_11], %14 {strides = array<i32>} : memref<16x64xf32, #tpu.memory_space<vmem>>, vector<1x64xf32>,
    %c4 = arith.constant 4 : index
    %16 = memref.load %arg0[%c4] : memref<16xi32, #tpu.memory_space<smem>>
    %17 = arith.index_cast %16 : i32 to index
    %c0_12 = arith.constant 0 : index
    %18 = vector.load %arg1[%17, %c0_12] : memref<32x64xf32, #tpu.memory_space<vmem>>, vector<1x64xf32>
    %c4_13 = arith.constant 4 : index
    %c0_14 = arith.constant 0 : index
    %19 = vector.load %arg5[%c4_13, %c0_14] : memref<16x64xf32, #tpu.memory_space<vmem>>, vector<1x64xf32>
    tpu.vector_store %arg5[%c4_13, %c0_14], %18 {strides = array<i32>} : memref<16x64xf32, #tpu.memory_space<vmem>>, vector<1x64xf32>,
    %c5 = arith.constant 5 : index
    %20 = memref.load %arg0[%c5] : memref<16xi32, #tpu.memory_space<smem>>
    %21 = arith.index_cast %20 : i32 to index
    %c0_15 = arith.constant 0 : index
    %22 = vector.load %arg1[%21, %c0_15] : memref<32x64xf32, #tpu.memory_space<vmem>>, vector<1x64xf32>
    %c5_16 = arith.constant 5 : index
    %c0_17 = arith.constant 0 : index
    %23 = vector.load %arg5[%c5_16, %c0_17] : memref<16x64xf32, #tpu.memory_space<vmem>>, vector<1x64xf32>
    tpu.vector_store %arg5[%c5_16, %c0_17], %22 {strides = array<i32>} : memref<16x64xf32, #tpu.memory_space<vmem>>, vector<1x64xf32>,
    %c6 = arith.constant 6 : index
    %24 = memref.load %arg0[%c6] : memref<16xi32, #tpu.memory_space<smem>>
    %25 = arith.index_cast %24 : i32 to index
    %c0_18 = arith.constant 0 : index
    %26 = vector.load %arg1[%25, %c0_18] : memref<32x64xf32, #tpu.memory_space<vmem>>, vector<1x64xf32>
    %c6_19 = arith.constant 6 : index
    %c0_20 = arith.constant 0 : index
    %27 = vector.load %arg5[%c6_19, %c0_20] : memref<16x64xf32, #tpu.memory_space<vmem>>, vector<1x64xf32>
    tpu.vector_store %arg5[%c6_19, %c0_20], %26 {strides = array<i32>} : memref<16x64xf32, #tpu.memory_space<vmem>>, vector<1x64xf32>,
    %c7 = arith.constant 7 : index
    %28 = memref.load %arg0[%c7] : memref<16xi32, #tpu.memory_space<smem>>
    %29 = arith.index_cast %28 : i32 to index
    %c0_21 = arith.constant 0 : index
    %30 = vector.load %arg1[%29, %c0_21] : memref<32x64xf32, #tpu.memory_space<vmem>>, vector<1x64xf32>
    %c7_22 = arith.constant 7 : index
    %c0_23 = arith.constant 0 : index
    %31 = vector.load %arg5[%c7_22, %c0_23] : memref<16x64xf32, #tpu.memory_space<vmem>>, vector<1x64xf32>
    tpu.vector_store %arg5[%c7_22, %c0_23], %30 {strides = array<i32>} : memref<16x64xf32, #tpu.memory_space<vmem>>, vector<1x64xf32>,
    %c8 = arith.constant 8 : index
    %32 = memref.load %arg0[%c8] : memref<16xi32, #tpu.memory_space<smem>>
    %33 = arith.index_cast %32 : i32 to index
    %c0_24 = arith.constant 0 : index
    %34 = vector.load %arg1[%33, %c0_24] : memref<32x64xf32, #tpu.memory_space<vmem>>, vector<1x64xf32>
    %c8_25 = arith.constant 8 : index
    %c0_26 = arith.constant 0 : index
    %35 = vector.load %arg5[%c8_25, %c0_26] : memref<16x64xf32, #tpu.memory_space<vmem>>, vector<1x64xf32>
    tpu.vector_store %arg5[%c8_25, %c0_26], %34 {strides = array<i32>} : memref<16x64xf32, #tpu.memory_space<vmem>>, vector<1x64xf32>,
    %c9 = arith.constant 9 : index
    %36 = memref.load %arg0[%c9] : memref<16xi32, #tpu.memory_space<smem>>
    %37 = arith.index_cast %36 : i32 to index
    %c0_27 = arith.constant 0 : index
    %38 = vector.load %arg1[%37, %c0_27] : memref<32x64xf32, #tpu.memory_space<vmem>>, vector<1x64xf32>
    %c9_28 = arith.constant 9 : index
    %c0_29 = arith.constant 0 : index
    %39 = vector.load %arg5[%c9_28, %c0_29] : memref<16x64xf32, #tpu.memory_space<vmem>>, vector<1x64xf32>
    tpu.vector_store %arg5[%c9_28, %c0_29], %38 {strides = array<i32>} : memref<16x64xf32, #tpu.memory_space<vmem>>, vector<1x64xf32>,
    %c10 = arith.constant 10 : index
    %40 = memref.load %arg0[%c10] : memref<16xi32, #tpu.memory_space<smem>>
    %41 = arith.index_cast %40 : i32 to index
    %c0_30 = arith.constant 0 : index
    %42 = vector.load %arg1[%41, %c0_30] : memref<32x64xf32, #tpu.memory_space<vmem>>, vector<1x64xf32>
    %c10_31 = arith.constant 10 : index
    %c0_32 = arith.constant 0 : index
    %43 = vector.load %arg5[%c10_31, %c0_32] : memref<16x64xf32, #tpu.memory_space<vmem>>, vector<1x64xf32>
    tpu.vector_store %arg5[%c10_31, %c0_32], %42 {strides = array<i32>} : memref<16x64xf32, #tpu.memory_space<vmem>>, vector<1x64xf32>,
    %c11 = arith.constant 11 : index
    %44 = memref.load %arg0[%c11] : memref<16xi32, #tpu.memory_space<smem>>
    %45 = arith.index_cast %44 : i32 to index
    %c0_33 = arith.constant 0 : index
    %46 = vector.load %arg1[%45, %c0_33] : memref<32x64xf32, #tpu.memory_space<vmem>>, vector<1x64xf32>
    %c11_34 = arith.constant 11 : index
    %c0_35 = arith.constant 0 : index
    %47 = vector.load %arg5[%c11_34, %c0_35] : memref<16x64xf32, #tpu.memory_space<vmem>>, vector<1x64xf32>
    tpu.vector_store %arg5[%c11_34, %c0_35], %46 {strides = array<i32>} : memref<16x64xf32, #tpu.memory_space<vmem>>, vector<1x64xf32>,
    %c12 = arith.constant 12 : index
    %48 = memref.load %arg0[%c12] : memref<16xi32, #tpu.memory_space<smem>>
    %49 = arith.index_cast %48 : i32 to index
    %c0_36 = arith.constant 0 : index
    %50 = vector.load %arg1[%49, %c0_36] : memref<32x64xf32, #tpu.memory_space<vmem>>, vector<1x64xf32>
    %c12_37 = arith.constant 12 : index
    %c0_38 = arith.constant 0 : index
    %51 = vector.load %arg5[%c12_37, %c0_38] : memref<16x64xf32, #tpu.memory_space<vmem>>, vector<1x64xf32>
    tpu.vector_store %arg5[%c12_37, %c0_38], %50 {strides = array<i32>} : memref<16x64xf32, #tpu.memory_space<vmem>>, vector<1x64xf32>,
    %c13 = arith.constant 13 : index
    %52 = memref.load %arg0[%c13] : memref<16xi32, #tpu.memory_space<smem>>
    %53 = arith.index_cast %52 : i32 to index
    %c0_39 = arith.constant 0 : index
    %54 = vector.load %arg1[%53, %c0_39] : memref<32x64xf32, #tpu.memory_space<vmem>>, vector<1x64xf32>
    %c13_40 = arith.constant 13 : index
    %c0_41 = arith.constant 0 : index
    %55 = vector.load %arg5[%c13_40, %c0_41] : memref<16x64xf32, #tpu.memory_space<vmem>>, vector<1x64xf32>
    tpu.vector_store %arg5[%c13_40, %c0_41], %54 {strides = array<i32>} : memref<16x64xf32, #tpu.memory_space<vmem>>, vector<1x64xf32>,
    %c14 = arith.constant 14 : index
    %56 = memref.load %arg0[%c14] : memref<16xi32, #tpu.memory_space<smem>>
    %57 = arith.index_cast %56 : i32 to index
    %c0_42 = arith.constant 0 : index
    %58 = vector.load %arg1[%57, %c0_42] : memref<32x64xf32, #tpu.memory_space<vmem>>, vector<1x64xf32>
    %c14_43 = arith.constant 14 : index
    %c0_44 = arith.constant 0 : index
    %59 = vector.load %arg5[%c14_43, %c0_44] : memref<16x64xf32, #tpu.memory_space<vmem>>, vector<1x64xf32>
    tpu.vector_store %arg5[%c14_43, %c0_44], %58 {strides = array<i32>} : memref<16x64xf32, #tpu.memory_space<vmem>>, vector<1x64xf32>,
    %c15 = arith.constant 15 : index
    %60 = memref.load %arg0[%c15] : memref<16xi32, #tpu.memory_space<smem>>
    %61 = arith.index_cast %60 : i32 to index
    %c0_45 = arith.constant 0 : index
    %62 = vector.load %arg1[%61, %c0_45] : memref<32x64xf32, #tpu.memory_space<vmem>>, vector<1x64xf32>
    %c15_46 = arith.constant 15 : index
    %c0_47 = arith.constant 0 : index
    %63 = vector.load %arg5[%c15_46, %c0_47] : memref<16x64xf32, #tpu.memory_space<vmem>>, vector<1x64xf32>
    tpu.vector_store %arg5[%c15_46, %c0_47], %62 {strides = array<i32>} : memref<16x64xf32, #tpu.memory_space<vmem>>, vector<1x64xf32>,
    %c0_48 = arith.constant 0 : index
    %c0_49 = arith.constant 0 : index
    %64 = vector.load %arg5[%c0_48, %c0_49] : memref<16x64xf32, #tpu.memory_space<vmem>>, vector<16x64xf32>
    %cst = arith.constant 0.000000e+00 : f32
    %65 = vector.broadcast %cst : f32 to vector<16x64xf32>
    %66 = arith.maximumf %64, %65 : vector<16x64xf32>
    %c0_50 = arith.constant 0 : index
    %c0_51 = arith.constant 0 : index
    %67 = vector.load %arg2[%c0_50, %c0_51] : memref<64x128xf32, #tpu.memory_space<vmem>>, vector<64x128xf32>
    %cst_52 = arith.constant dense<0.000000e+00> : vector<16x128xf32>
    %68 = tpu.matmul %66, %67, %cst_52 {dimension_numbers = #tpu.dot_dimension_numbers<[1], [0], [0], [1], [0, 0, 1, 1], [], []>} : vector<16x64xf32>, vector<64x128xf32>, vector<16x128xf32> -> vector<16x128xf32>
    %c0_53 = arith.constant 0 : index
    %c0_54 = arith.constant 0 : index
    %69 = vector.load %arg3[%c0_53, %c0_54] : memref<1x128xf32, #tpu.memory_space<vmem>>, vector<1x128xf32>
    %70 = vector.broadcast %69 : vector<1x128xf32> to vector<16x128xf32>
    %71 = arith.addf %68, %70 : vector<16x128xf32>
    %cst_55 = arith.constant dense<0xFF800000> : vector<16xf32>
    %72 = vector.multi_reduction <maximumf>, %71, %cst_55 [1] : vector<16x128xf32> to vector<16xf32>
    %73 = vector.shape_cast %72 : vector<16xf32> to vector<16x1xf32>
    %74 = vector.broadcast %73 : vector<16x1xf32> to vector<16x128xf32>
    %75 = arith.subf %71, %74 : vector<16x128xf32>
    %76 = math.exp %75 : vector<16x128xf32>
    %cst_56 = arith.constant dense<0.000000e+00> : vector<16xf32>
    %77 = vector.multi_reduction <add>, %76, %cst_56 [1] : vector<16x128xf32> to vector<16xf32>
    %78 = vector.shape_cast %77 : vector<16xf32> to vector<16x1xf32>
    %79 = tpu.reciprocal %78 {approx = true} : vector<16x1xf32> -> vector<16x1xf32>
    %80 = vector.broadcast %79 : vector<16x1xf32> to vector<16x128xf32>
    %81 = arith.mulf %76, %80 : vector<16x128xf32>
    %c0_57 = arith.constant 0 : index
    %c0_58 = arith.constant 0 : index
    %82 = vector.load %arg4[%c0_57, %c0_58] : memref<16x128xf32, #tpu.memory_space<vmem>>, vector<16x128xf32>
    tpu.vector_store %arg4[%c0_57, %c0_58], %81 {strides = array<i32>} : memref<16x128xf32, #tpu.memory_space<vmem>>, vector<16x128xf32>,
    return
  }
}

</mosaic_0001>

<bundles_post_ra>
// kernel: _lambda_.1
= control target key start
LH: loop header
LB: loop body
LE: loop exit
PB: predicated region body
PF: predicated region fallthrough
CT: control target
= control target key end

     0   :  { %9 = vsyncpa [#allocation6], 0  ;;  %s445_s0 = inlined_call_operand.hbm [shape: s32[16], index: 0, kind: input, shape index: {}]   ;;  %s446_s1 = inlined_call_operand.hbm [shape: f32[32,64], index: 1, kind: input, shape index: {}]   ;;  %s447_s2 = inlined_call_operand.hbm [shape: f32[64,128], index: 2, kind: input, shape index: {}]   ;;  %s448_s3 = inlined_call_operand.vmem [shape: f32[1,128], index: 3, kind: input, shape index: {}]   ;;  %s449_s4 = inlined_call_operand.hbm [shape: f32[16,128], index: 4, kind: output, shape index: {}]  }
   0x1   :  { %10 = vsyncpa [#allocation4], 0 }
   0x2   :  { %11 = vsyncpa [#allocation9], 0 }
   0x3   :  { %12 = vsyncpa [#allocation5], 0  ;;  %s18_s17 = sshll.u32 %s445_s0, 4  ;;  %s26_s20 = sshll.u32 %s446_s1, 4  ;;  %s19_s17 = int_to_ptr.hbm [resolvable:$true] %s18_s17  ;;  %s27_s20 = int_to_ptr.hbm [resolvable:$true] %s26_s20 }
   0x4   :  { %s363_s21 = smov [#allocation3]   ;;  %s364_s22 = smov [#allocation7]  }
   0x5   :  { %21 = dma.hbm_to_smem %s19_s17, 16, %s363_s21, [#allocation6]  }
   0x6   :  { %s28_s23 = sshll.u32 %s364_s22, 4  ;;  %s365_s24 = smov 128   ;;  %s29_s23 = int_to_ptr.vmem [resolvable:$true] %s28_s23 }
   0x7   :  { %s366_s25 = smov 8   ;;  %s39_s0 = sshll.u32 %s447_s2, 4  ;;  %s40_s0 = int_to_ptr.hbm [resolvable:$true] %s39_s0 }
   0x8   :  { %34 = dma.hbm_to_vmem [thread:$0]  %s27_s20, 512, %s29_s23, [#allocation4], %s365_s24, %s365_s24, %s366_s25  }
   0x9   :  { %s367_s28 = smov [#allocation8]  }
   0xa   :  { %s41_s29 = sshll.u32 %s367_s28, 4  ;;  %s42_s29 = int_to_ptr.vmem [resolvable:$true] %s41_s29 }
   0xb   :  { %47 = dma.hbm_to_vmem [thread:$0]  %s40_s0, 1024, %s42_s29, [#allocation9], %s365_s24, %s365_s24, %s366_s25  }
   0xc   :  { %355 = dma.done.wait [#allocation6], 16  }
   0xd   :  { %356 = vsyncadd [#allocation6], 4294967280 }
   0xe   :  { %357 = dma.done.wait [#allocation4], 512  }
   0xf   :  { %358 = vsyncadd [#allocation4], 4294966784 }
  0x10   :  { %359 = dma.done.wait [#allocation9], 1024  }
  0x11   :  { %360 = vsyncadd [#allocation9], 4294966272 }
  0x12   :  { %62 = sfence }
  0x13   :  { %v139_v0 = vld [vmem:[#allocation8 + $0x38] sm:$0xff]  ;;  %v138_v1 = vld [vmem:[#allocation8 + $0x30] sm:$0xff]  ;;  %s63_s1 = sld [smem:[#allocation3]]  ;;  %v137_v2 = vld [vmem:[#allocation8 + $0x28] sm:$0xff]  ;;  %vm66_vm0 = vcmask 516096   ;;  %vm144_vm1 = vcmask 523264  }
  0x14   :  { %159 = vmatpush.msra.mxu0 %v139_v0  ;;  %248 = vmatpush.msra.mxu1 %v139_v0  ;;  %s231_s2 = sld [smem:[#allocation3 + $0x1]]  ;;  %v136_v3 = vld [vmem:[#allocation8 + $0x20] sm:$0xff]  ;;  %v135_v4 = vld [vmem:[#allocation8 + $0x18] sm:$0xff]  ;;  %v134_v6 = vld [vmem:[#allocation8 + $0x10] sm:$0xff] }
  0x15   :  { %s232_s30 = sld [smem:[#allocation3 + $0x2]]  ;;  %v133_v9 = vld [vmem:[#allocation8 + $0x8] sm:$0xff]  ;;  %v132_v12 = vld [vmem:[#allocation8] sm:$0xff]  ;;  %v262_v28 = vld [vmem:[%s448_s3] ss:$0 sm:$0xff]  ;;  %s368_s3 = smov [#allocation10]  }
  0x16   :  { %160 = vmatpush.msra.mxu0 %v138_v1  ;;  %249 = vmatpush.msra.mxu1 %v138_v1  ;;  %s233_s5 = sld [smem:[#allocation3 + $0x3]] }
  0x17   :  { %s234_s6 = sld [smem:[#allocation3 + $0x4]] }
  0x18   :  { %161 = vmatpush.msra.mxu0 %v137_v2  ;;  %250 = vmatpush.msra.mxu1 %v137_v2  ;;  %s409_s7 = sld [smem:[#allocation3 + $0x5]] }
  0x19   :  { %s411_s8 = sld [smem:[#allocation3 + $0x6]]  ;;  %s64_s9 = scalar_lea.vmem [#allocation7], %s63_s1 }
  0x1a   :  { %162 = vmatpush.msra.mxu0 %v136_v3  ;;  %251 = vmatpush.msra.mxu1 %v136_v3  ;;  %v65_v5 = vld [vmem:[%s64_s9] sm:$0x1]  ;;  %s413_s10 = sld [smem:[#allocation3 + $0x7]]  ;;  %s69_s11 = scalar_lea.vmem [#allocation7], %s231_s2 }
  0x1b   :  { %67 = vst.msk [vmem:[#allocation2] sm:$0x1] %vm66_vm0, %v65_v5  ;;  %v70_v7 = vld [vmem:[%s69_s11] sm:$0x1]  ;;  %s73_s12 = scalar_lea.vmem [#allocation7], %s232_s30  ;;  %s238_s18 = sld [smem:[#allocation3 + $0x8]] }
  0x1c   :  { %163 = vmatpush.msra.mxu0 %v135_v4  ;;  %71 = vst.msk [vmem:[#allocation2 + $0x1] sm:$0x1] %vm66_vm0, %v70_v7  ;;  %v74_v8 = vld [vmem:[%s73_s12] sm:$0x1]  ;;  %252 = vmatpush.msra.mxu1 %v135_v4  ;;  %s77_s13 = scalar_lea.vmem [#allocation7], %s233_s5  ;;  %s239_s19 = sld [smem:[#allocation3 + $0x9]] }
  0x1d   :  { %75 = vst.msk [vmem:[#allocation2 + $0x2] sm:$0x1] %vm66_vm0, %v74_v8  ;;  %v78_v10 = vld [vmem:[%s77_s13] sm:$0x1]  ;;  %s81_s14 = scalar_lea.vmem [#allocation7], %s234_s6  ;;  %s240_s20 = sld [smem:[#allocation3 + $0xa]] }
  0x1e   :  { %164 = vmatpush.msra.mxu0 %v134_v6  ;;  %79 = vst.msk [vmem:[#allocation2 + $0x3] sm:$0x1] %vm66_vm0, %v78_v10  ;;  %v82_v11 = vld [vmem:[%s81_s14] sm:$0x1]  ;;  %253 = vmatpush.msra.mxu1 %v134_v6  ;;  %s85_s15 = scalar_lea.vmem [#allocation7], %s409_s7  ;;  %s241_s21 = sld [smem:[#allocation3 + $0xb]] }
  0x1f   :  { %83 = vst.msk [vmem:[#allocation2 + $0x4] sm:$0x1] %vm66_vm0, %v82_v11  ;;  %v86_v13 = vld [vmem:[%s85_s15] sm:$0x1]  ;;  %s89_s16 = scalar_lea.vmem [#allocation7], %s411_s8  ;;  %s242_s22 = sld [smem:[#allocation3 + $0xc]] }
  0x20   :  { %165 = vmatpush.msra.mxu0 %v133_v9  ;;  %87 = vst.msk [vmem:[#allocation2 + $0x5] sm:$0x1] %vm66_vm0, %v86_v13  ;;  %v90_v14 = vld [vmem:[%s89_s16] sm:$0x1]  ;;  %254 = vmatpush.msra.mxu1 %v133_v9  ;;  %s93_s17 = scalar_lea.vmem [#allocation7], %s413_s10  ;;  %s243_s23 = sld [smem:[#allocation3 + $0xd]] }
  0x21   :  { %91 = vst.msk [vmem:[#allocation2 + $0x6] sm:$0x1] %vm66_vm0, %v90_v14  ;;  %v94_v15 = vld [vmem:[%s93_s17] sm:$0x1]  ;;  %s244_s26 = sld [smem:[#allocation3 + $0xe]]  ;;  %s97_s27 = scalar_lea.vmem [#allocation7], %s238_s18 }
  0x22   :  { %166 = vmatpush.msra.mxu0 %v132_v12  ;;  %95 = vst.msk [vmem:[#allocation2 + $0x7] sm:$0x1] %vm66_vm0, %v94_v15  ;;  %255 = vmatpush.msra.mxu1 %v132_v12  ;;  %v98_v16 = vld [vmem:[%s97_s27] sm:$0x1]  ;;  %s245_s0 = sld [smem:[#allocation3 + $0xf]]  ;;  %s101_s28 = scalar_lea.vmem [#allocation7], %s239_s19 }
  0x23   :  { %99 = vst.msk [vmem:[#allocation2 + $0x8] sm:$0x1] %vm66_vm0, %v98_v16  ;;  %v102_v18 = vld [vmem:[%s101_s28] sm:$0x1]  ;;  %s105_s29 = scalar_lea.vmem [#allocation7], %s240_s20  ;;  %s198_s9 = sshll.u32 %s368_s3, 4  ;;  %s199_s9 = int_to_ptr.vmem [resolvable:$true] %s198_s9 }
  0x24   :  { %103 = vst.msk [vmem:[#allocation2 + $0x9] sm:$0x1] %vm66_vm0, %v102_v18  ;;  %v106_v20 = vld [vmem:[%s105_s29] sm:$0x1]  ;;  %s109_s1 = scalar_lea.vmem [#allocation7], %s241_s21  ;;  %s200_s12 = sshll.u32 %s449_s4, 4  ;;  %s201_s12 = int_to_ptr.hbm [resolvable:$true] %s200_s12 }
  0x25   :  { %107 = vst.msk [vmem:[#allocation2 + $0xa] sm:$0x1] %vm66_vm0, %v106_v20  ;;  %v110_v21 = vld [vmem:[%s109_s1] sm:$0x1]  ;;  %s113_s2 = scalar_lea.vmem [#allocation7], %s242_s22 }
  0x26   :  { %111 = vst.msk [vmem:[#allocation2 + $0xb] sm:$0x1] %vm66_vm0, %v110_v21  ;;  %v114_v22 = vld [vmem:[%s113_s2] sm:$0x1]  ;;  %s117_s30 = scalar_lea.vmem [#allocation7], %s243_s23 }
  0x27   :  { %115 = vst.msk [vmem:[#allocation2 + $0xc] sm:$0x1] %vm66_vm0, %v114_v22  ;;  %v118_v23 = vld [vmem:[%s117_s30] sm:$0x1]  ;;  %s121_s5 = scalar_lea.vmem [#allocation7], %s244_s26 }
  0x28   :  { %119 = vst.msk [vmem:[#allocation2 + $0xd] sm:$0x1] %vm66_vm0, %v118_v23  ;;  %v122_v24 = vld [vmem:[%s121_s5] sm:$0x1]  ;;  %s125_s6 = scalar_lea.vmem [#allocation7], %s245_s0 }
  0x29   :  { %v128_v17 = vld [vmem:[#allocation2] sm:$0xff]  ;;  %123 = vst.msk [vmem:[#allocation2 + $0xe] sm:$0x1] %vm66_vm0, %v122_v24 }
  0x2a   :  { %v130_v19 = vmax.f32 %v128_v17, 0.0  ;;  %v126_v25 = vld [vmem:[%s125_s6] sm:$0x1] }
  0x2b   :  { %127 = vst.msk [vmem:[#allocation2 + $0xf] sm:$0x1] %vm66_vm0, %v126_v25 }
  0x2c   :  { %246 = vmatmul.msk.f32.vlgmr.msra.gmra.mxu0 %vm144_vm1, %v130_v19 }
  0x32   :  { %v129_v26 = vld [vmem:[#allocation2 + $0x8] sm:$0xff] }
  0x33   :  { %v131_v27 = vmax.f32 %v129_v26, 0.0 }
  0x35   :  { %247 = vmatmul.msk.f32.vlgmr.msra.gmra.mxu1 %vm144_vm1, %v131_v27 }
  0xa9   :  { %v168_v29 = vpop.f32.mrf.mxu0 }
  0xaa   :  { %v169_v30 = vadd.f32 %v262_v28, %v168_v29 }
  0xac   :  { %174 = vmax.xlane.f32.xlu0 %v169_v30 }
  0xb2   :  { %v171_v31 = vpop.f32.mrf.mxu1 }
  0xb3   :  { %v172_v32 = vadd.f32 %v262_v28, %v171_v31 }
  0xb5   :  { %176 = vmax.xlane.f32.xlu0 %v172_v32 }
 0x11f   :  { %v175_v33 = vpop.xlane.xlu0 %174 }
 0x120   :  { %v178_v34 = vsub.f32 %v169_v30, %v175_v33 }
 0x122   :  { %v180_v35 = vmul.f32 1.442695, %v178_v34 }
 0x124   :  { %263 = vpow2.f32 %v180_v35 }
 0x128   :  { %v177_v37 = vpop.xlane.xlu0 %176 }
 0x129   :  { %v179_v38 = vsub.f32 %v172_v32, %v177_v37 }
 0x12a   :  { %v264_v36 = vpop.eup %263 }
 0x12b   :  { %184 = vadd.xlane.f32.xlu1 %v264_v36  ;;  %v182_v39 = vmul.f32 1.442695, %v179_v38 }
 0x12d   :  { %265 = vpow2.f32 %v182_v39 }
 0x133   :  { %v266_v40 = vpop.eup %265 }
 0x134   :  { %186 = vadd.xlane.f32.xlu1 %v266_v40 }
 0x19e   :  { %v185_v41 = vpop.xlane.xlu1 %184 }
 0x19f   :  { %267 = vrcp.f32 %v185_v41 }
 0x1a5   :  { %v268_v42 = vpop.eup %267 }
 0x1a6   :  { %v190_v43 = vmul.f32 %v268_v42, %v264_v36 }
 0x1a7   :  { %v187_v44 = vpop.xlane.xlu1 %186 }
 0x1a8   :  { %192 = vst [vmem:[#allocation10] sm:$0xff] %v190_v43  ;;  %269 = vrcp.f32 %v187_v44 }
 0x1ae   :  { %v270_v45 = vpop.eup %269 }
 0x1af   :  { %v191_v46 = vmul.f32 %v270_v45, %v266_v40 }
 0x1b1   :  { %193 = vst [vmem:[#allocation10 + $0x8] sm:$0xff] %v191_v46 }
 0x1b2   :  { %206 = dma.vmem_to_hbm [thread:$0]  %s199_s9, 256, %s201_s12, [#allocation5], %s365_s24, %s365_s24, %s366_s25  }
 0x1b3   :  { %361 = dma.done.wait [#allocation5], 256  }
 0x1b4   :  { %362 = vsyncadd [#allocation5], 4294967040 }
 0x1b5   :  { %211 = vsyncpa [#allocation4], 1 }
 0x1b6   :  { %212 = vsyncpa [#allocation9], 1 }
 0x1b7   :  { %213 = vsyncpa [#allocation5], 1 }
 0x1b8   :  { %214 = vsyncpa [#allocation6], 1 }

</bundles_post_ra>
